<compile_context>
chip_gen: v6e
topology: v6e:2x2x1
jax: 0.10.0
libtpu: 0.0.40
codegen_flags: <defaults>
</compile_context>

<pallas_src>
import functools
import math

import jax
import jax.numpy as jnp
from jax.experimental import pallas as pl
from jax.experimental.pallas import tpu as pltpu


def _round_up(v, m):
    return ((v + m - 1) // m) * m


def conv_dilate_kernel(xf_ref, xc_ref, xb_ref, w_ref, b_ref, o_ref,
                       slab_ref, cols_ref, *,
                       kernel_size, dilation, pad_front, pad_back,
                       halo_front_rows):
    """One (batch, time-tile) grid step.

    xf_ref:   (1, Hf, C_in)     8-row-aligned block just before this tile (front halo)
    xc_ref:   (1, Tt, C_in)     current time tile of the UNPADDED input
    xb_ref:   (1, Hb, C_in)     8-row-aligned block just after this tile (back halo)
    w_ref:    (K*C_in, C_out)   taps flattened into the contraction dim
    b_ref:    (1, C_out)
    o_ref:    (1, Tt, C_out)
    slab_ref: (pad_front + Tt + pad_back, C_in)  VMEM scratch: zero-padded window
    cols_ref: (Tt, K*C_in)                       VMEM scratch: im2col slab
    """
    t = pl.program_id(1)
    n_t = pl.num_programs(1)
    t_tile = o_ref.shape[1]
    c_in = xc_ref.shape[2]

    # ---- assemble the zero-padded ("SAME"/causal) input window in VMEM ------
    slab_ref[pl.ds(pad_front, t_tile), :] = xc_ref[0]

    if pad_front > 0:
        @pl.when(t == 0)
        def _zero_front():
            slab_ref[0:pad_front, :] = jnp.zeros((pad_front, c_in), slab_ref.dtype)

        @pl.when(t > 0)
        def _copy_front():
            slab_ref[0:pad_front, :] = (
                xf_ref[0, halo_front_rows - pad_front:halo_front_rows, :])

    if pad_back > 0:
        back0 = pad_front + t_tile

        @pl.when(t == n_t - 1)
        def _zero_back():
            slab_ref[back0:back0 + pad_back, :] = jnp.zeros((pad_back, c_in),
                                                            slab_ref.dtype)

        @pl.when(t < n_t - 1)
        def _copy_back():
            slab_ref[back0:back0 + pad_back, :] = xb_ref[0, 0:pad_back, :]

    # ---- im2col: fold the K taps into a single K*C_in-deep MXU contraction --
    for k in range(kernel_size):
        cols_ref[:, k * c_in:(k + 1) * c_in] = slab_ref[pl.ds(k * dilation, t_tile), :]

    acc = jnp.dot(cols_ref[...], w_ref[...], preferred_element_type=jnp.float32)
    o_ref[0] = (acc + b_ref[...].astype(jnp.float32)).astype(o_ref.dtype)


def _pick_t_tile(T, unit, target):
    """Largest multiple of `unit` that divides T and is <= target; else T."""
    best = None
    c = unit
    limit = min(T, target)
    while c <= limit:
        if T % c == 0:
            best = c
        c += unit
    return best if best is not None else T


def conv_dilate(x, weight, bias, *, kernel_size, dilation, causal=False,
                t_tile_target=512):
    """x: (B, T, C_in); weight: (K, C_in, C_out); bias: (C_out,) -> (B, T, C_out)."""
    B, T, C_in = x.shape
    K = kernel_size
    C_out = weight.shape[2]

    total_pad = (K - 1) * dilation
    if causal:
        pad_front, pad_back = total_pad, 0
    else:
        pad_front = total_pad // 2
        pad_back = total_pad - pad_front

    # Halo neighbour blocks are 8-sublane-aligned slabs of the *unpadded* x.
    hf = max(8, _round_up(pad_front, 8))
    hb = max(8, _round_up(pad_back, 8))

    # Time tile: multiple of the halo block sizes, divides T, bounded by
    # t_tile_target so double-buffered tiles stay well inside the scoped-VMEM
    # budget (v7x has only 64 MiB physical VMEM -- do not blindly enlarge).
    unit = math.lcm(8, hf, hb)
    t_tile = _pick_t_tile(T, unit, t_tile_target)
    n_t = pl.cdiv(T, t_tile)          # == T // t_tile unless we fell back to t_tile == T

    f_ratio = t_tile // hf            # front-halo blocks per time tile
    b_ratio = t_tile // hb            # back-halo blocks per time tile
    n_b_blocks = pl.cdiv(T, hb)

    # Weight flattened so row (k*C_in + c) <-> W[k, c, :]; done once in the wrapper.
    w2 = weight.reshape(K * C_in, C_out)
    bias2d = bias.reshape(1, C_out)

    kern = functools.partial(
        conv_dilate_kernel,
        kernel_size=K, dilation=dilation,
        pad_front=pad_front, pad_back=pad_back, halo_front_rows=hf)

    front_spec = pl.BlockSpec(
        (1, hf, C_in), lambda b, t: (b, jnp.maximum(t * f_ratio - 1, 0), 0))
    cur_spec = pl.BlockSpec((1, t_tile, C_in), lambda b, t: (b, t, 0))
    back_spec = pl.BlockSpec(
        (1, hb, C_in),
        lambda b, t: (b, jnp.minimum((t + 1) * b_ratio, n_b_blocks - 1), 0))
    w_spec = pl.BlockSpec((K * C_in, C_out), lambda b, t: (0, 0))
    b_spec = pl.BlockSpec((1, C_out), lambda b, t: (0, 0))
    out_spec = pl.BlockSpec((1, t_tile, C_out), lambda b, t: (b, t, 0))

    return pl.pallas_call(
        kern,
        out_shape=jax.ShapeDtypeStruct((B, T, C_out), x.dtype),
        grid_spec=pltpu.PrefetchScalarGridSpec(
            num_scalar_prefetch=0,
            grid=(B, n_t),
            in_specs=[front_spec, cur_spec, back_spec, w_spec, b_spec],
            out_specs=out_spec,
            scratch_shapes=[
                pltpu.VMEM((pad_front + t_tile + pad_back, C_in), x.dtype),
                pltpu.VMEM((t_tile, K * C_in), x.dtype),
            ]),
        compiler_params=pltpu.CompilerParams(
            dimension_semantics=("parallel", "parallel")),
    )(x, x, x, w2, bias2d)


def conv_dilate_ref(x, weight, bias, *, kernel_size, dilation, causal=False):
    """Pure-JAX reference with identical semantics."""
    B, T, C_in = x.shape
    total_pad = (kernel_size - 1) * dilation
    if causal:
        pad_front, pad_back = total_pad, 0
    else:
        pad_front = total_pad // 2
        pad_back = total_pad - pad_front
    x_pad = jnp.pad(x, ((0, 0), (pad_front, pad_back), (0, 0)))
    out = jnp.broadcast_to(bias[None, None, :],
                           (B, T, weight.shape[2])).astype(jnp.float32)
    for k in range(kernel_size):
        out = out + jnp.einsum('btc,cd->btd',
                               x_pad[:, k * dilation:k * dilation + T, :],
                               weight[k])
    return out.astype(x.dtype)


if __name__ == "__main__":
    # Small shapes consistent with the module's forward: x is (batch, seq, in_channel).
    B, T, C_in, C_out = 2, 32, 4, 8
    K, DIL = 3, 2

    key = jax.random.PRNGKey(0)
    kx, kw = jax.random.split(key)
    x = jax.random.normal(kx, (B, T, C_in), dtype=jnp.float32)

    # Deterministic parameter init mirroring utils.truncated_normal_(w, 0, 0.02)
    # on the PyTorch weight (C_out, C_in, 1, K); bias zeroed.
    w_torch = 0.02 * jax.random.truncated_normal(
        kw, -2.0, 2.0, (C_out, C_in, 1, K), dtype=jnp.float32)
    weight = jnp.transpose(w_torch[:, :, 0, :], (2, 1, 0))   # (K, C_in, C_out)
    bias = jnp.zeros((C_out,), dtype=jnp.float32)

    for causal in (False, True):
        # t_tile_target=16 forces two time tiles so the cross-tile halo path runs.
        out = conv_dilate(x, weight, bias, kernel_size=K, dilation=DIL,
                          causal=causal, t_tile_target=16)
        out = jax.block_until_ready(out)
        ref = conv_dilate_ref(x, weight, bias, kernel_size=K, dilation=DIL,
                              causal=causal)
        assert out.shape == (B, T, C_out), out.shape
        assert jnp.allclose(out, ref, atol=1e-5, rtol=1e-5), (
            f"mismatch vs reference (causal={causal})")

    print("KERNEL_OK")
</pallas_src>

<mosaic_0001>
module attributes {stable_mosaic.version = 11 : i64} {
  func.func @conv_dilate_kernel(%arg0: i32, %arg1: i32, %arg2: memref<1x8x4xf32, #tpu.memory_space<vmem>>, %arg3: memref<1x16x4xf32, #tpu.memory_space<vmem>>, %arg4: memref<1x8x4xf32, #tpu.memory_space<vmem>>, %arg5: memref<12x8xf32, #tpu.memory_space<vmem>>, %arg6: memref<1x8xf32, #tpu.memory_space<vmem>>, %arg7: memref<1x16x8xf32, #tpu.memory_space<vmem>>, %arg8: memref<20x4xf32, #tpu.memory_space<vmem>>, %arg9: memref<16x12xf32, #tpu.memory_space<vmem>>) attributes {dimension_semantics = [#tpu.dimension_semantics<parallel>, #tpu.dimension_semantics<parallel>], iteration_bounds = array<i64: 2, 2>, scalar_prefetch = 0 : i64, scratch_operands = 2 : i64, tpu.core_type = #tpu.core_type<tc>, window_params = [{transform_indices = @transform_0, window_bounds = array<i64: 1, 8, 4>}, {transform_indices = @transform_1, window_bounds = array<i64: 1, 16, 4>}, {transform_indices = @transform_2, window_bounds = array<i64: 1, 8, 4>}, {pipeline_mode = #tpu.pipeline_mode<synchronous>, transform_indices = @transform_3, window_bounds = array<i64: 12, 8>}, {pipeline_mode = #tpu.pipeline_mode<synchronous>, transform_indices = @transform_4, window_bounds = array<i64: 1, 8>}, {transform_indices = @transform_5, window_bounds = array<i64: 1, 16, 8>}]} {
    %c0 = arith.constant 0 : index
    %c0_0 = arith.constant 0 : index
    %c0_1 = arith.constant 0 : index
    %0 = vector.load %arg3[%c0, %c0_0, %c0_1] : memref<1x16x4xf32, #tpu.memory_space<vmem>>, vector<1x16x4xf32>
    %1 = vector.shape_cast %0 : vector<1x16x4xf32> to vector<16x4xf32>
    %c2 = arith.constant 2 : index
    %c0_2 = arith.constant 0 : index
    %2 = vector.load %arg8[%c2, %c0_2] : memref<20x4xf32, #tpu.memory_space<vmem>>, vector<16x4xf32>
    tpu.vector_store %arg8[%c2, %c0_2], %1 {strides = array<i32>} : memref<20x4xf32, #tpu.memory_space<vmem>>, vector<16x4xf32>,
    %c0_i32 = arith.constant 0 : i32
    %3 = arith.cmpi eq, %arg1, %c0_i32 : i32
    %4 = arith.extui %3 : i1 to i32
    %c0_i32_3 = arith.constant 0 : i32
    %5 = arith.cmpi ne, %4, %c0_i32_3 : i32
    scf.if %5 {
      %cst_28 = arith.constant 0.000000e+00 : f32
      %30 = vector.broadcast %cst_28 : f32 to vector<2x4xf32>
      %c0_29 = arith.constant 0 : index
      %c0_30 = arith.constant 0 : index
      %31 = vector.load %arg8[%c0_29, %c0_30] : memref<20x4xf32, #tpu.memory_space<vmem>>, vector<2x4xf32>
      tpu.vector_store %arg8[%c0_29, %c0_30], %30 {strides = array<i32>} : memref<20x4xf32, #tpu.memory_space<vmem>>, vector<2x4xf32>,
    } else {
    }
    %c0_i32_4 = arith.constant 0 : i32
    %6 = arith.cmpi sgt, %arg1, %c0_i32_4 : i32
    %7 = arith.extui %6 : i1 to i32
    %c0_i32_5 = arith.constant 0 : i32
    %8 = arith.cmpi ne, %7, %c0_i32_5 : i32
    scf.if %8 {
      %c0_28 = arith.constant 0 : index
      %c6 = arith.constant 6 : index
      %c0_29 = arith.constant 0 : index
      %30 = vector.load %arg2[%c0_28, %c6, %c0_29] : memref<1x8x4xf32, #tpu.memory_space<vmem>>, vector<1x2x4xf32>
      %31 = vector.shape_cast %30 : vector<1x2x4xf32> to vector<2x4xf32>
      %c0_30 = arith.constant 0 : index
      %c0_31 = arith.constant 0 : index
      %32 = vector.load %arg8[%c0_30, %c0_31] : memref<20x4xf32, #tpu.memory_space<vmem>>, vector<2x4xf32>
      tpu.vector_store %arg8[%c0_30, %c0_31], %31 {strides = array<i32>} : memref<20x4xf32, #tpu.memory_space<vmem>>, vector<2x4xf32>,
    } else {
    }
    %c1_i32 = arith.constant 1 : i32
    %9 = arith.cmpi eq, %arg1, %c1_i32 : i32
    %10 = arith.extui %9 : i1 to i32
    %c0_i32_6 = arith.constant 0 : i32
    %11 = arith.cmpi ne, %10, %c0_i32_6 : i32
    scf.if %11 {
      %cst_28 = arith.constant 0.000000e+00 : f32
      %30 = vector.broadcast %cst_28 : f32 to vector<2x4xf32>
      %c18 = arith.constant 18 : index
      %c0_29 = arith.constant 0 : index
      %31 = vector.load %arg8[%c18, %c0_29] : memref<20x4xf32, #tpu.memory_space<vmem>>, vector<2x4xf32>
      tpu.vector_store %arg8[%c18, %c0_29], %30 {strides = array<i32>} : memref<20x4xf32, #tpu.memory_space<vmem>>, vector<2x4xf32>,
    } else {
    }
    %c1_i32_7 = arith.constant 1 : i32
    %12 = arith.cmpi slt, %arg1, %c1_i32_7 : i32
    %13 = arith.extui %12 : i1 to i32
    %c0_i32_8 = arith.constant 0 : i32
    %14 = arith.cmpi ne, %13, %c0_i32_8 : i32
    scf.if %14 {
      %c0_28 = arith.constant 0 : index
      %c0_29 = arith.constant 0 : index
      %c0_30 = arith.constant 0 : index
      %30 = vector.load %arg4[%c0_28, %c0_29, %c0_30] : memref<1x8x4xf32, #tpu.memory_space<vmem>>, vector<1x2x4xf32>
      %31 = vector.shape_cast %30 : vector<1x2x4xf32> to vector<2x4xf32>
      %c18 = arith.constant 18 : index
      %c0_31 = arith.constant 0 : index
      %32 = vector.load %arg8[%c18, %c0_31] : memref<20x4xf32, #tpu.memory_space<vmem>>, vector<2x4xf32>
      tpu.vector_store %arg8[%c18, %c0_31], %31 {strides = array<i32>} : memref<20x4xf32, #tpu.memory_space<vmem>>, vector<2x4xf32>,
    } else {
    }
    %c0_9 = arith.constant 0 : index
    %c0_10 = arith.constant 0 : index
    %15 = vector.load %arg8[%c0_9, %c0_10] : memref<20x4xf32, #tpu.memory_space<vmem>>, vector<16x4xf32>
    %c0_11 = arith.constant 0 : index
    %c0_12 = arith.constant 0 : index
    %16 = vector.load %arg9[%c0_11, %c0_12] : memref<16x12xf32, #tpu.memory_space<vmem>>, vector<16x4xf32>
    tpu.vector_store %arg9[%c0_11, %c0_12], %15 {strides = array<i32>} : memref<16x12xf32, #tpu.memory_space<vmem>>, vector<16x4xf32>,
    %c2_13 = arith.constant 2 : index
    %c0_14 = arith.constant 0 : index
    %17 = vector.load %arg8[%c2_13, %c0_14] : memref<20x4xf32, #tpu.memory_space<vmem>>, vector<16x4xf32>
    %c0_15 = arith.constant 0 : index
    %c4 = arith.constant 4 : index
    %18 = vector.load %arg9[%c0_15, %c4] : memref<16x12xf32, #tpu.memory_space<vmem>>, vector<16x4xf32>
    tpu.vector_store %arg9[%c0_15, %c4], %17 {strides = array<i32>} : memref<16x12xf32, #tpu.memory_space<vmem>>, vector<16x4xf32>,
    %c4_16 = arith.constant 4 : index
    %c0_17 = arith.constant 0 : index
    %19 = vector.load %arg8[%c4_16, %c0_17] : memref<20x4xf32, #tpu.memory_space<vmem>>, vector<16x4xf32>
    %c0_18 = arith.constant 0 : index
    %c8 = arith.constant 8 : index
    %20 = vector.load %arg9[%c0_18, %c8] : memref<16x12xf32, #tpu.memory_space<vmem>>, vector<16x4xf32>
    tpu.vector_store %arg9[%c0_18, %c8], %19 {strides = array<i32>} : memref<16x12xf32, #tpu.memory_space<vmem>>, vector<16x4xf32>,
    %c0_19 = arith.constant 0 : index
    %c0_20 = arith.constant 0 : index
    %21 = vector.load %arg9[%c0_19, %c0_20] : memref<16x12xf32, #tpu.memory_space<vmem>>, vector<16x12xf32>
    %c0_21 = arith.constant 0 : index
    %c0_22 = arith.constant 0 : index
    %22 = vector.load %arg5[%c0_21, %c0_22] : memref<12x8xf32, #tpu.memory_space<vmem>>, vector<12x8xf32>
    %cst = arith.constant dense<0.000000e+00> : vector<16x8xf32>
    %23 = tpu.matmul %21, %22, %cst {dimension_numbers = #tpu.dot_dimension_numbers<[1], [0], [0], [1], [0, 0, 1, 1], [], []>} : vector<16x12xf32>, vector<12x8xf32>, vector<16x8xf32> -> vector<16x8xf32>
    %c0_23 = arith.constant 0 : index
    %c0_24 = arith.constant 0 : index
    %24 = vector.load %arg6[%c0_23, %c0_24] : memref<1x8xf32, #tpu.memory_space<vmem>>, vector<1x8xf32>
    %25 = vector.broadcast %24 : vector<1x8xf32> to vector<16x8xf32>
    %26 = arith.addf %23, %25 : vector<16x8xf32>
    %c0_25 = arith.constant 0 : index
    %c0_26 = arith.constant 0 : index
    %c0_27 = arith.constant 0 : index
    %27 = vector.load %arg7[%c0_25, %c0_26, %c0_27] : memref<1x16x8xf32, #tpu.memory_space<vmem>>, vector<1x16x8xf32>
    %28 = vector.shape_cast %27 : vector<1x16x8xf32> to vector<16x8xf32>
    %29 = vector.shape_cast %26 : vector<16x8xf32> to vector<1x16x8xf32>
    tpu.vector_store %arg7[%c0_25, %c0_26, %c0_27], %29 {strides = array<i32>} : memref<1x16x8xf32, #tpu.memory_space<vmem>>, vector<1x16x8xf32>,
    return
  }
  func.func @transform_0(%arg0: i32, %arg1: i32) -> (i32, i32, i32) {
    %c2_i32 = arith.constant 2 : i32
    %0 = arith.muli %arg1, %c2_i32 : i32
    %c1_i32 = arith.constant 1 : i32
    %1 = arith.subi %0, %c1_i32 : i32
    %c0_i32 = arith.constant 0 : i32
    %2 = arith.maxsi %1, %c0_i32 : i32
    %c0_i32_0 = arith.constant 0 : i32
    %c0_i32_1 = arith.constant 0 : i32
    return %arg0, %2, %c0_i32_0 : i32, i32, i32
  }
  func.func @transform_1(%arg0: i32, %arg1: i32) -> (i32, i32, i32) {
    %c0_i32 = arith.constant 0 : i32
    %c0_i32_0 = arith.constant 0 : i32
    return %arg0, %arg1, %c0_i32 : i32, i32, i32
  }
  func.func @transform_2(%arg0: i32, %arg1: i32) -> (i32, i32, i32) {
    %c1_i32 = arith.constant 1 : i32
    %0 = arith.addi %arg1, %c1_i32 : i32
    %c2_i32 = arith.constant 2 : i32
    %1 = arith.muli %0, %c2_i32 : i32
    %c3_i32 = arith.constant 3 : i32
    %2 = arith.minsi %1, %c3_i32 : i32
    %c0_i32 = arith.constant 0 : i32
    %c0_i32_0 = arith.constant 0 : i32
    return %arg0, %2, %c0_i32 : i32, i32, i32
  }
  func.func @transform_3(%arg0: i32, %arg1: i32) -> (i32, i32) {
    %c0_i32 = arith.constant 0 : i32
    %c0_i32_0 = arith.constant 0 : i32
    %c0_i32_1 = arith.constant 0 : i32
    return %c0_i32, %c0_i32_0 : i32, i32
  }
  func.func @transform_4(%arg0: i32, %arg1: i32) -> (i32, i32) {
    %c0_i32 = arith.constant 0 : i32
    %c0_i32_0 = arith.constant 0 : i32
    %c0_i32_1 = arith.constant 0 : i32
    return %c0_i32, %c0_i32_0 : i32, i32
  }
  func.func @transform_5(%arg0: i32, %arg1: i32) -> (i32, i32, i32) {
    %c0_i32 = arith.constant 0 : i32
    %c0_i32_0 = arith.constant 0 : i32
    return %arg0, %arg1, %c0_i32 : i32, i32, i32
  }
}

</mosaic_0001>

<bundles_post_ra>
// kernel: tpu_custom_call.1
= control target key start
LH: loop header
LB: loop body
LE: loop exit
PB: predicated region body
PF: predicated region fallthrough
CT: control target
= control target key end

     0   :  { %s848_s18 = smov 0   ;;  %s850_s19 = smov 0   ;;  %s937_s0 = inlined_call_operand.vmem [shape: f32[2,32,4], index: 0, kind: input, shape index: {}]   ;;  %s938_s1 = inlined_call_operand.vmem [shape: f32[2,32,4], index: 1, kind: input, shape index: {}]   ;;  %s939_s2 = inlined_call_operand.vmem [shape: f32[2,32,4], index: 2, kind: input, shape index: {}]   ;;  %s940_s3 = inlined_call_operand.vmem [shape: f32[12,8], index: 3, kind: input, shape index: {}]   ;;  %s941_s4 = inlined_call_operand.vmem [shape: f32[1,8], index: 4, kind: input, shape index: {}]   ;;  %s942_s5 = inlined_call_operand.vmem [shape: f32[2,32,8], index: 5, kind: output, shape index: {}]  }
   0x1   :  { %s852_s20 = smov 0   ;;  %s854_s21 = smov 0  }
   0x2   :  { %s856_s22 = smov 0  }
   0x3 LB: > { %s24_s23 = sadd.s32 1, %s804_s20  ;;  %s27_s24 = sadd.s32 1, %s808_s21  ;;  %s812_s22 = sphi %s856_s22, %s15_s22   ;;  %s808_s21 = sphi %s854_s21, %s947_s21   ;;  %s804_s20 = sphi %s852_s20, %s946_s20   ;;  %s800_s19 = sphi %s850_s19, %s945_s19   ;;  %s796_s18 = sphi %s848_s18, %s944_s18  }
   0x4   : > { %p25_p0 = scmp.ge.s32.totalorder %s24_s23, 2  ;;  %p679_p1 = scmp.ge.s32.totalorder %s812_s22, 1 }
   0x5   : > { %p270_p2 = scmp.lt.s32.totalorder %s812_s22, 5 }
   0x6   : > { %s949_s23 = smov (%p25_p0, %s24_s23), 0  ;;  %s951_s24 = smov (!%p25_p0, %s27_s24), %s808_s21 }
   0x7   : > { %p271_p3 = pnand %p679_p1, %p270_p2  ;;  %p29_p4 = scmp.ge.s32.totalorder %s951_s24, 2 }
   0x8   : > { %s680_s25 = sshll.u32 (!%p271_p3), %s796_s18, 1  ;;  %p334_p5 = scmp.lt.s32.totalorder (!%p271_p3), %s800_s19, 1 }
   0x9   : > { %s953_s24 = smov (%p29_p4, %s951_s24), 0  ;;  %274 = sbr.rel (%p271_p3) target bundleno = 382 (0x17e), region = 40 }
   0xa   : > { %s681_s26 = sadd.s32 (!%p271_p3), 4294967295, %s680_s25  ;;  %p349_p6 = scmp.lt.s32.totalorder (!%p271_p3), %s680_s25, 3 }
   0xb   : > { %p332_p7 = scmp.gt.s32.totalorder (!%p271_p3), %s681_s26, 0  ;;  %p682_p8 = scmp.lt.s32.totalorder (!%p271_p3), %s681_s26, 3 }
   0xc   : > { %s718_s28 = sadd.s32 (!%p271_p3), 2, %s680_s25  ;;  %p701_p10 = scmp.ne.s32.totalorder (!%p271_p3), %s796_s18, 0 }
   0xd   : > { %p881_p9 = scmp.lt.s32.totalorder (!%p271_p3), %s718_s28, 3 }
   0xe   : > { %s955_s19 = smov (!%p334_p5, %s800_s19), 1  ;;  %s957_s26 = smov (!%p332_p7, %s681_s26), 0  ;;  %vm384_vm0 = vcmask 31744  }
   0xf   : > { %s687_s27 = sshll.u32 %s955_s19, 2  ;;  %s959_s26 = smov (!%p682_p8, %s957_s26), 3 }
  0x10   : > { %s961_s25 = smov (!%p349_p6, %s680_s25), 3  ;;  %s339_s29 = sadd.s32 %s959_s26, %s687_s27 }
  0x11   : > { %s688_s6 = sshll.u32 %s339_s29, 3  ;;  %s352_s7 = sadd.s32 %s687_s27, %s961_s25 }
  0x12   : > { %s341_s10 = scalar_lea.vmem %s937_s0, %s688_s6  ;;  %s691_s11 = sshll.u32 %s352_s7, 3 }
  0x13   : > { %s354_s14 = scalar_lea.vmem %s938_s1, %s691_s11  ;;  %s894_s17 = scalar_lea.vmem %s942_s5, %s691_s11 }
  0x14   : > { %s963_s28 = smov (!%p881_p9, %s718_s28), 3  ;;  %v382_v0 = vld [vmem:[%s354_s14] sm:$0xff]  ;;  %v383_v1 = vld [vmem:[%s354_s14 + $0x8] sm:$0xff]  ;;  %390 = sbr.rel (%p701_p10) target bundleno = 27 (0x1b), region = 44 }
  0x15   : > { %385 = vst.msk [vmem:[#allocation2 + $0x2] sm:$0xff] %vm384_vm0, %v382_v0  ;;  %386 = vst.msk [vmem:[#allocation2 + $0xa] sm:$0xff] %vm384_vm0, %v383_v1  ;;  %s965_s28 = smov (!%p881_p9, %s963_s28), 3 }
  0x16   : > { %s365_s19 = sadd.s32 %s687_s27, %s965_s28 }
  0x17   : > { %s697_s25 = sshll.u32 %s365_s19, 3 }
  0x18   : > { %s367_s6 = scalar_lea.vmem %s939_s2, %s697_s25 }
  0x19   : > { %vm391_vm1 = vcmask 25600   ;;  %v814_v2 = vmov 0.0  }
  0x1a   : > { %392 = vst.msk [vmem:[#allocation2] sm:$0x3] %vm391_vm1, %v814_v2 }
  0x1b PF: > { %p702_p11 = scmp.le.s32.totalorder %s796_s18, 0 }
  0x1d   : > { %396 = sbr.rel (%p702_p11) target bundleno = 36 (0x24), region = 48 }
  0x22   : > { %v397_v3 = vld [vmem:[%s341_s10 + $0x6] sm:$0x3]  ;;  %vm398_vm2 = vcmask 25600  }
  0x23   : > { %399 = vst.msk [vmem:[#allocation2] sm:$0x3] %vm398_vm2, %v397_v3 }
  0x24 PF: > { %p703_p12 = scmp.ne.s32.totalorder %s796_s18, 1 }
  0x26   : > { %403 = sbr.rel (%p703_p12) target bundleno = 45 (0x2d), region = 52 }
  0x2b   : > { %vm404_vm3 = vcmask 25600   ;;  %v815_v4 = vmov 0.0  }
  0x2c   : > { %405 = vst.msk [vmem:[#allocation2 + $0x12] sm:$0x3] %vm404_vm3, %v815_v4 }
  0x2d PF: > { %p704_p13 = scmp.ge.s32.totalorder %s796_s18, 1 }
  0x2f   : > { %409 = sbr.rel (%p704_p13) target bundleno = 54 (0x36), region = 56 }
  0x34   : > { %v410_v5 = vld [vmem:[%s367_s6] sm:$0x3]  ;;  %vm411_vm4 = vcmask 25600  }
  0x35   : > { %412 = vst.msk [vmem:[#allocation2 + $0x12] sm:$0x3] %vm411_vm4, %v410_v5 }
  0x36 PF: > { %v417_v6 = vld [vmem:[#allocation2 + $0x2] sm:$0xff]  ;;  %s816_s27 = smov 4   ;;  %s817_s28 = smov 8   ;;  %vm461_vm5 = vcmask 1043456   ;;  %v418_v10 = vld [vmem:[#allocation2 + $0xa] sm:$0xff]  ;;  %vm427_vm6 = vcmask 64544  }
  0x37   : > { %v430_v7 = vld [vmem:[#allocation2 + $0x4] sm:$0xff]  ;;  %421 = vrot.lane.b32.xlu0 %v417_v6, %s816_s27  ;;  %vm440_vm7 = vcmask 97344   ;;  %vm454_vm8 = vcmask 97280   ;;  %v705_v20 = vld [vmem:[%s941_s4] ss:$0 sm:$0xff]  ;;  %vm540_vm9 = vcmask 64512  }
  0x38   : > { %434 = vrot.lane.b32.xlu1 %v430_v7, %s817_s28  ;;  %v413_v8 = vld [vmem:[#allocation2] sm:$0xff]  ;;  %v414_v9 = vld [vmem:[#allocation2 + $0x8] sm:$0xff] }
  0x39   : > { %415 = vst.msk [vmem:[#allocation3] sm:$0xff] %vm384_vm0, %v413_v8  ;;  %416 = vst.msk [vmem:[#allocation3 + $0x8] sm:$0xff] %vm384_vm0, %v414_v9  ;;  %v446_v12 = vld [vmem:[%s940_s3 + $0x8] sm:$0xf]  ;;  %v445_v13 = vld [vmem:[%s940_s3] sm:$0xff] }
  0x3a   : > { %723 = vmatprep.subr.msk.mxu0 %vm461_vm5, %v446_v12 }
  0x3b   : > { %724 = vmatpush3.msk.msra.mxu0 %vm461_vm5, %v446_v12  ;;  %423 = vrot.lane.b32.xlu0 %v418_v10, %s816_s27 }
  0x3c   : > { %v431_v11 = vld [vmem:[#allocation2 + $0xc] sm:$0xff]  ;;  %725 = vmatprep.subr.mxu0 %v445_v13 }
  0x3d   : > { %436 = vrot.lane.b32.xlu1 %v431_v11, %s817_s28  ;;  %726 = vmatpush3.msra.mxu0 %v445_v13 }
  0xa9   : > { %v422_v14 = vpop.permute.xlu0 %421 }
  0xaa   : > { %v435_v15 = vpop.permute.xlu1 %434  ;;  %428 = vst.msk [vmem:[#allocation3] sm:$0xff] %vm427_vm6, %v422_v14 }
  0xab   : > { %441 = vst.msk [vmem:[#allocation3] sm:$0xff] %vm440_vm7, %v435_v15 }
  0xad   : > { %v424_v16 = vpop.permute.xlu0 %423 }
  0xae   : > { %429 = vst.msk [vmem:[#allocation3 + $0x8] sm:$0xff] %vm427_vm6, %v424_v16 }
  0xaf   : > { %v437_v17 = vpop.permute.xlu1 %436 }
  0xb0   : > { %442 = vst.msk [vmem:[#allocation3 + $0x8] sm:$0xff] %vm440_vm7, %v437_v17 }
  0xb2   : > { %v443_v18 = vld [vmem:[#allocation3] sm:$0xff] }
  0xb3   : > { %727 = vmatprep.mubr.msk.f32.mxu0 %vm454_vm8, %v443_v18 }
  0xb7   : > { %v444_v19 = vld [vmem:[#allocation3 + $0x8] sm:$0xff] }
  0xb8   : > { %728 = vmatmul.mubr.msk.f32.vlgmr.msra.gmra.mxu0 %vm454_vm8, %v444_v19 }
 0x178   : > { %v729_v21 = vpop.f32.mrf.mxu0 }
 0x179   : > { %v537_v22 = vadd.f32 %v729_v21, %v705_v20 }
 0x17a   : > { %v531_v23 = vpop.f32.mrf.mxu0 }
 0x17b   : > { %542 = vst.msk [vmem:[%s894_s17 + $0x8] sm:$0xff] %vm540_vm9, %v537_v22  ;;  %v532_v24 = vadd.f32 %v705_v20, %v531_v23 }
 0x17d   : > { %541 = vst.msk [vmem:[%s894_s17] sm:$0xff] %vm540_vm9, %v532_v24 }
 0x17e PF: > { %s15_s22 = sadd.s32 1, %s812_s22   ;;  %s944_s18 = smov %s804_s20 }
 0x17f   : > { %p12_p0 = scmp.ge.s32.totalorder %s15_s22, 6   ;;  %s945_s19 = smov %s808_s21 }
 0x180   : > { %s946_s20 = smov %s949_s23  ;;  %s947_s21 = smov %s953_s24 }
 0x181   :  { %14 = sbr.rel (!%p12_p0) target bundleno = 3 (0x3), region = 92 }

</bundles_post_ra>
